<compile_context>
chip_gen: v5e
topology: v5e:2x2
jax: 0.10.0
libtpu: 0.0.40
codegen_flags: <defaults>
</compile_context>

<pallas_src>
import functools

import jax
import jax.numpy as jnp
from jax import lax
from jax.experimental import pallas as pl
from jax.experimental.pallas import tpu as pltpu


_MAX_TILE_ROWS = 4096
_CHUNK_LANES = 512          # target D-chunk width for the in-kernel loop
_CHUNK_MIN_FEAT = 1024      # only chunk when D is at least this wide


def _feat_chunk(feat):
    """Lane-chunk width for the wide-D reduction, or None for single-shot."""
    if feat < _CHUNK_MIN_FEAT or feat % 128 != 0:
        return None
    for cand in (_CHUNK_LANES, 384, 256, 128):
        if feat % cand == 0:
            return cand
    return None


def _triplet_kernel(margin_ref, a_ref, p_ref, n_ref, out_ref, *, true_b,
                    chunk):
    """One (TB, D) batch tile -> (1, 1) partial sum of hinge losses."""
    tb, feat = a_ref.shape
    margin = margin_ref[0]

    def chunk_delta(start, width):
        a = a_ref[:, pl.ds(start, width)].astype(jnp.float32)
        p = p_ref[:, pl.ds(start, width)].astype(jnp.float32)
        n = n_ref[:, pl.ds(start, width)].astype(jnp.float32)
        # dp - dn == sum((a-p)^2 - (a-n)^2) == sum((n - p) * (2a - p - n))
        return jnp.sum((n - p) * (2.0 * a - p - n), axis=1, keepdims=True)

    if chunk is None or chunk >= feat:
        delta = chunk_delta(0, feat)                        # (TB, 1)
    else:
        # Static Python loop -> static lane slices (free ref views); the
        # sequential accumulation keeps live f32 upcast intermediates to
        # O(TB x chunk) instead of O(TB x D).
        delta = jnp.zeros((tb, 1), jnp.float32)
        for start in range(0, feat, chunk):
            delta = delta + chunk_delta(start, chunk)

    losses = jnp.maximum(delta + margin, 0.0)               # (TB, 1)

    # Zero out zero-padded batch rows so they do not contribute to the sum.
    row = pl.program_id(0) * tb + lax.broadcasted_iota(jnp.int32,
                                                       losses.shape, 0)
    losses = jnp.where(row < true_b, losses, 0.0)

    out_ref[...] = jnp.sum(losses, axis=0, keepdims=True)   # (1, 1)


def _vmem_capacity_bytes():
    try:
        info = pltpu.get_tpu_info()
        cap = getattr(info, "vmem_capacity_bytes", None)
        if cap:
            return int(cap)
    except Exception:
        pass
    return 64 << 20     # conservative fallback (v7x per-TensorCore VMEM)


def _plan(batch, feat, itemsize):
    """Return (tile_rows, vmem_limit_bytes, chunk) for the current TPU gen."""
    cap = _vmem_capacity_bytes()
    if cap >= (100 << 20):                       # v5e / v6e: 128 MiB physical
        vmem_limit = 96 << 20
    else:                                        # v7x: 64 MiB per TensorCore
        vmem_limit = min(56 << 20, (cap * 7) // 8)

    chunk = _feat_chunk(feat)
    feat_live = chunk if chunk is not None else feat
    # Per tile row:  3 inputs x 2 pipeline buffers of the HBM dtype, plus
    # ~6 live (row, feat_live) f32 intermediates (upcasts / diff / product).
    per_row = 6 * feat * itemsize + 6 * feat_live * 4
    budget = (vmem_limit * 3) // 4               # headroom: out bufs, scratch
    tb = max(8, min(_MAX_TILE_ROWS, budget // max(per_row, 1)))
    tb = max(8, (tb // 8) * 8)                   # multiple of 8 sublanes

    b_pad8 = ((batch + 7) // 8) * 8
    tb = min(tb, b_pad8)
    if b_pad8 >= 16:
        # Guarantee >= 2 grid tiles so ("parallel",) can shard the batch
        # axis across both v7x TensorCores (negligible cost on v5e/v6e).
        half = (((b_pad8 // 2) + 7) // 8) * 8
        tb = min(tb, half)
    return tb, vmem_limit, chunk


def triplet_loss(anchor, positive, negative, margin, size_average=True, *,
                 block_rows=None, cast_inputs_to_bf16=False):
    """Pallas TPU TripletLoss forward; matches the PyTorch module semantics."""
    assert anchor.shape == positive.shape == negative.shape
    assert anchor.ndim == 2

    if cast_inputs_to_bf16:
        # Opt-in: halves HBM traffic (the kernel is bandwidth bound); the
        # in-kernel math stays f32, only the inputs are quantized.
        anchor = anchor.astype(jnp.bfloat16)
        positive = positive.astype(jnp.bfloat16)
        negative = negative.astype(jnp.bfloat16)

    batch, feat = anchor.shape
    itemsize = jnp.dtype(anchor.dtype).itemsize

    tb, vmem_limit, chunk = _plan(batch, feat, itemsize)
    if block_rows is not None:
        tb = max(8, (int(block_rows) // 8) * 8)
    num_tiles = int(pl.cdiv(batch, tb))
    b_pad = num_tiles * tb

    if b_pad != batch:
        pad = ((0, b_pad - batch), (0, 0))
        anchor = jnp.pad(anchor, pad)
        positive = jnp.pad(positive, pad)
        negative = jnp.pad(negative, pad)

    margin_arr = jnp.full((1,), margin, dtype=jnp.float32)
    kernel = functools.partial(_triplet_kernel, true_b=batch, chunk=chunk)

    tile_spec = pl.BlockSpec((tb, feat), lambda i, margin_smem: (i, 0))

    partials = pl.pallas_call(
        kernel,
        out_shape=jax.ShapeDtypeStruct((num_tiles, 1), jnp.float32),
        grid_spec=pltpu.PrefetchScalarGridSpec(
            num_scalar_prefetch=1,                 # margin -> SMEM
            grid=(num_tiles,),
            in_specs=[tile_spec, tile_spec, tile_spec],
            out_specs=pl.BlockSpec((1, 1), lambda i, margin_smem: (i, 0)),
        ),
        compiler_params=pltpu.CompilerParams(
            dimension_semantics=("parallel",),
            vmem_limit_bytes=vmem_limit,
        ),
        cost_estimate=pl.CostEstimate(
            flops=5 * b_pad * feat,
            transcendentals=0,
            bytes_accessed=3 * b_pad * feat * itemsize + 4 * num_tiles + 4,
        ),
    )(margin_arr, anchor, positive, negative)

    total = jnp.sum(partials)
    return total / batch if size_average else total


def _triplet_loss_ref(anchor, positive, negative, margin, size_average=True):
    a = anchor.astype(jnp.float32)
    p = positive.astype(jnp.float32)
    n = negative.astype(jnp.float32)
    dp = jnp.sum((a - p) ** 2, axis=1)
    dn = jnp.sum((a - n) ** 2, axis=1)
    losses = jnp.maximum(dp - dn + margin, 0.0)
    return jnp.mean(losses) if size_average else jnp.sum(losses)


if __name__ == "__main__":
    key = jax.random.PRNGKey(0)
    margin = 1.0

    # (batch, feat, dtype, explicit block_rows, cast_inputs_to_bf16)
    cases = [
        (8, 32, jnp.float32, None, False),      # small single-tile case
        (10, 48, jnp.float32, None, False),     # batch padding + in-kernel mask
        (24, 128, jnp.float32, 8, False),       # explicit multi-tile grid
        (16, 256, jnp.bfloat16, None, False),   # bf16 kept through the DMA
        (32, 2048, jnp.bfloat16, None, False),  # wide-D chunked reduction path
        (16, 256, jnp.float32, None, True),     # opt-in bf16 input cast
    ]

    for (B, D, dtype, br, cast) in cases:
        k1, k2, k3 = jax.random.split(
            jax.random.fold_in(key, B * 10000 + D), 3)
        a = jax.random.normal(k1, (B, D), jnp.float32).astype(dtype)
        p = jax.random.normal(k2, (B, D), jnp.float32).astype(dtype)
        n = jax.random.normal(k3, (B, D), jnp.float32).astype(dtype)

        # Reference sees exactly what the kernel sees (incl. optional cast).
        ra, rp, rn = (a, p, n)
        if cast:
            ra, rp, rn = (x.astype(jnp.bfloat16) for x in (a, p, n))

        bf16_path = cast or dtype == jnp.bfloat16
        rtol = 1e-3 if bf16_path else 1e-4
        atol = 1e-2 if bf16_path else 1e-3
        for size_average in (True, False):
            out = triplet_loss(a, p, n, margin, size_average,
                               block_rows=br, cast_inputs_to_bf16=cast)
            jax.block_until_ready(out)
            ref = _triplet_loss_ref(ra, rp, rn, margin, size_average)
            assert jnp.allclose(out, ref, rtol=rtol, atol=atol), (
                B, D, str(jnp.dtype(dtype)), size_average, cast,
                float(out), float(ref))

    print("KERNEL_OK")
</pallas_src>

<mosaic_0001>
module attributes {stable_mosaic.version = 11 : i64} {
  func.func @_triplet_kernel(%arg0: i32, %arg1: memref<1xf32, #tpu.memory_space<smem>>, %arg2: memref<8x32xf32, #tpu.memory_space<vmem>>, %arg3: memref<8x32xf32, #tpu.memory_space<vmem>>, %arg4: memref<8x32xf32, #tpu.memory_space<vmem>>, %arg5: memref<1x1xf32, #tpu.memory_space<vmem>>) attributes {dimension_semantics = [#tpu.dimension_semantics<parallel>], iteration_bounds = array<i64: 1>, scalar_prefetch = 1 : i64, scratch_operands = 0 : i64, tpu.core_type = #tpu.core_type<tc>, window_params = [{transform_indices = @transform_0, window_bounds = array<i64: 8, 32>}, {transform_indices = @transform_1, window_bounds = array<i64: 8, 32>}, {transform_indices = @transform_2, window_bounds = array<i64: 8, 32>}, {transform_indices = @transform_3, window_bounds = array<i64: 1, 1>}]} {
    %c0 = arith.constant 0 : index
    %0 = memref.load %arg1[%c0] : memref<1xf32, #tpu.memory_space<smem>>
    %c0_0 = arith.constant 0 : index
    %c0_1 = arith.constant 0 : index
    %1 = vector.load %arg2[%c0_0, %c0_1] : memref<8x32xf32, #tpu.memory_space<vmem>>, vector<8x32xf32>
    %c0_2 = arith.constant 0 : index
    %c0_3 = arith.constant 0 : index
    %2 = vector.load %arg3[%c0_2, %c0_3] : memref<8x32xf32, #tpu.memory_space<vmem>>, vector<8x32xf32>
    %c0_4 = arith.constant 0 : index
    %c0_5 = arith.constant 0 : index
    %3 = vector.load %arg4[%c0_4, %c0_5] : memref<8x32xf32, #tpu.memory_space<vmem>>, vector<8x32xf32>
    %4 = arith.subf %3, %2 : vector<8x32xf32>
    %cst = arith.constant 2.000000e+00 : f32
    %5 = vector.broadcast %cst : f32 to vector<8x32xf32>
    %6 = arith.mulf %5, %1 : vector<8x32xf32>
    %7 = arith.subf %6, %2 : vector<8x32xf32>
    %8 = arith.subf %7, %3 : vector<8x32xf32>
    %9 = arith.mulf %4, %8 : vector<8x32xf32>
    %cst_6 = arith.constant dense<0.000000e+00> : vector<8xf32>
    %10 = vector.multi_reduction <add>, %9, %cst_6 [1] : vector<8x32xf32> to vector<8xf32>
    %11 = vector.shape_cast %10 : vector<8xf32> to vector<8x1xf32>
    %12 = vector.broadcast %0 : f32 to vector<8x1xf32>
    %13 = arith.addf %11, %12 : vector<8x1xf32>
    %cst_7 = arith.constant 0.000000e+00 : f32
    %14 = vector.broadcast %cst_7 : f32 to vector<8x1xf32>
    %15 = arith.maximumf %13, %14 : vector<8x1xf32>
    %c8_i32 = arith.constant 8 : i32
    %16 = arith.muli %arg0, %c8_i32 : i32
    %17 = tpu.iota {dimensions = array<i32: 0>} : vector<8x1xi32>
    %18 = vector.broadcast %16 : i32 to vector<8x1xi32>
    %19 = arith.addi %18, %17 : vector<8x1xi32>
    %c8_i32_8 = arith.constant 8 : i32
    %20 = vector.broadcast %c8_i32_8 : i32 to vector<8x1xi32>
    %21 = arith.cmpi slt, %19, %20 : vector<8x1xi32>
    %cst_9 = arith.constant 0.000000e+00 : f32
    %22 = vector.broadcast %cst_9 : f32 to vector<8x1xf32>
    %23 = arith.select %21, %15, %22 : vector<8x1xi1>, vector<8x1xf32>
    %cst_10 = arith.constant dense<0.000000e+00> : vector<1xf32>
    %24 = vector.multi_reduction <add>, %23, %cst_10 [0] : vector<8x1xf32> to vector<1xf32>
    %25 = vector.shape_cast %24 : vector<1xf32> to vector<1x1xf32>
    %c0_11 = arith.constant 0 : index
    %c0_12 = arith.constant 0 : index
    %26 = vector.load %arg5[%c0_11, %c0_12] : memref<1x1xf32, #tpu.memory_space<vmem>>, vector<1x1xf32>
    tpu.vector_store %arg5[%c0_11, %c0_12], %25 {strides = array<i32>} : memref<1x1xf32, #tpu.memory_space<vmem>>, vector<1x1xf32>,
    return
  }
  func.func @transform_0(%arg0: i32, %arg1: memref<1xf32, #tpu.memory_space<smem>>) -> (i32, i32) {
    %c0_i32 = arith.constant 0 : i32
    %c0_i32_0 = arith.constant 0 : i32
    return %arg0, %c0_i32 : i32, i32
  }
  func.func @transform_1(%arg0: i32, %arg1: memref<1xf32, #tpu.memory_space<smem>>) -> (i32, i32) {
    %c0_i32 = arith.constant 0 : i32
    %c0_i32_0 = arith.constant 0 : i32
    return %arg0, %c0_i32 : i32, i32
  }
  func.func @transform_2(%arg0: i32, %arg1: memref<1xf32, #tpu.memory_space<smem>>) -> (i32, i32) {
    %c0_i32 = arith.constant 0 : i32
    %c0_i32_0 = arith.constant 0 : i32
    return %arg0, %c0_i32 : i32, i32
  }
  func.func @transform_3(%arg0: i32, %arg1: memref<1xf32, #tpu.memory_space<smem>>) -> (i32, i32) {
    %c0_i32 = arith.constant 0 : i32
    %c0_i32_0 = arith.constant 0 : i32
    return %arg0, %c0_i32 : i32, i32
  }
}

</mosaic_0001>

<bundles_post_ra>
// kernel: tpu_custom_call.1
= control target key start
LH: loop header
LB: loop body
LE: loop exit
PB: predicated region body
PF: predicated region fallthrough
CT: control target
= control target key end

     0   :  { %10 = vsyncpa [#allocation5], 0  ;;  %s257_s0 = inlined_call_operand.<no memory space> [shape: f32[1], index: 0, kind: input, shape index: {}]   ;;  %s258_s1 = inlined_call_operand.hbm [shape: f32[8,32], index: 1, kind: input, shape index: {}]   ;;  %s259_s2 = inlined_call_operand.hbm [shape: f32[8,32], index: 2, kind: input, shape index: {}]   ;;  %s260_s3 = inlined_call_operand.hbm [shape: f32[8,32], index: 3, kind: input, shape index: {}]   ;;  %s261_s4 = inlined_call_operand.hbm [shape: f32[1,1], index: 4, kind: output, shape index: {}]  }
   0x1   :  { %11 = vsyncpa [#allocation8], 0  ;;  %s29_s17 = sshll.u32 %s259_s2, 4  ;;  %s30_s17 = int_to_ptr.hbm [resolvable:$true] %s29_s17 }
   0x2   :  { %12 = vsyncpa [#allocation6], 0  ;;  %s213_s18 = smov [#allocation7]   ;;  %s18_s22 = sshll.u32 %s258_s1, 4  ;;  %s19_s22 = int_to_ptr.hbm [resolvable:$true] %s18_s22 }
   0x3   :  { %s31_s19 = sshll.u32 %s213_s18, 4  ;;  %s214_s23 = smov [#allocation4]   ;;  %s32_s19 = int_to_ptr.vmem [resolvable:$true] %s31_s19 }
   0x4   :  { %34 = dma.hbm_to_vmem [thread:$0]  %s30_s17, 128, %s32_s19, [#allocation8]  }
   0x5   :  { %s20_s24 = sshll.u32 %s214_s23, 4  ;;  %s40_s27 = sshll.u32 %s260_s3, 4  ;;  %s21_s24 = int_to_ptr.vmem [resolvable:$true] %s20_s24  ;;  %s41_s27 = int_to_ptr.hbm [resolvable:$true] %s40_s27 }
   0x6   :  { %23 = dma.hbm_to_vmem [thread:$0]  %s19_s22, 128, %s21_s24, [#allocation5]  }
   0x7   :  { %s215_s2 = smov [#allocation9]  }
   0x8   :  { %s42_s28 = sshll.u32 %s215_s2, 4  ;;  %s43_s28 = int_to_ptr.vmem [resolvable:$true] %s42_s28 }
   0x9   :  { %45 = dma.hbm_to_vmem [thread:$0]  %s41_s27, 128, %s43_s28, [#allocation8]  }
   0xa   :  { %207 = dma.done.wait [#allocation5], 128  }
   0xb   :  { %208 = vsyncadd [#allocation5], 4294967168 }
   0xc   :  { %209 = dma.done.wait [#allocation8], 256  }
   0xd   :  { %210 = vsyncadd [#allocation8], 4294967040  ;;  %v59_v0 = vld [vmem:[#allocation4] sm:$0xff]  ;;  %v60_v1 = vld [vmem:[#allocation7] sm:$0xff]  ;;  %vm67_vm0 = vcmask 261120   ;;  %v71_v9 = vstv %s257_s0  ;;  %s216_s29 = smov [#allocation10]  }
   0xe   :  { %v61_v2 = vld [vmem:[#allocation9] sm:$0xff]  ;;  %v63_v3 = vmul.f32 2.0, %v59_v0  ;;  %s94_s30 = sshll.u32 %s216_s29, 4  ;;  %s96_s7 = sshll.u32 %s261_s4, 4  ;;  %vm87_vm1 = vcmask 0   ;;  %s95_s30 = int_to_ptr.vmem [resolvable:$true] %s94_s30  ;;  %s97_s7 = int_to_ptr.hbm [resolvable:$true] %s96_s7 }
   0xf   :  { %v62_v4 = vsub.f32 %v61_v2, %v60_v1 }
  0x10   :  { %v64_v5 = vsub.f32 %v63_v3, %v60_v1 }
  0x12   :  { %v65_v6 = vsub.f32 %v64_v5, %v61_v2 }
  0x14   :  { %v66_v7 = vmul.f32 %v65_v6, %v62_v4 }
  0x16   :  { %v68_v8 = vsel %vm67_vm0, %v66_v7, 0.0 }
  0x17   :  { %69 = vadd.xlane.f32.xlu0 %v68_v8 }
  0x8a   :  { %v70_v10 = vpop.xlane.xlu0 %69 }
  0x8b   :  { %v72_v11 = vadd.f32 %v71_v9, %v70_v10 }
  0x8d   :  { %v73_v12 = vmax.f32 %v72_v11, 0.0 }
  0x8f   :  { %v81_v13 = vrot.slane %v73_v12, 4 }
  0x91   :  { %v82_v14 = vadd.f32 %v81_v13, %v73_v12 }
  0x93   :  { %v83_v15 = vrot.slane %v82_v14, 2 }
  0x95   :  { %v84_v16 = vadd.f32 %v83_v15, %v82_v14 }
  0x97   :  { %v85_v17 = vrot.slane %v84_v16, 1 }
  0x99   :  { %v86_v18 = vadd.f32 %v85_v17, %v84_v16 }
  0x9b   :  { %88 = vst.msk [vmem:[#allocation10] sm:$0x1] %vm87_vm1, %v86_v18 }
  0x9c   :  { %99 = dma.vmem_to_hbm [thread:$0]  %s95_s30, 16, %s97_s7, [#allocation6]  }
  0x9d   :  { %211 = dma.done.wait [#allocation6], 16  }
  0x9e   :  { %212 = vsyncadd [#allocation6], 4294967280 }
  0x9f   :  { %104 = vsyncpa [#allocation5], 1 }
  0xa0   :  { %105 = vsyncpa [#allocation8], 1 }
  0xa1   :  { %106 = vsyncpa [#allocation6], 1 }

</bundles_post_ra>
